<compile_context>
chip_gen: v7x
topology: tpu7x:2x2x1
jax: 0.10.0
libtpu: 0.0.40
codegen_flags: <defaults>
</compile_context>

<pallas_src>
import functools

import jax
import jax.numpy as jnp
import numpy as np
from jax import lax
from jax.experimental import pallas as pl
from jax.experimental.pallas import tpu as pltpu

FEATURE_DIM = 9
STATE_DIM = FEATURE_DIM + 3 + 1          # 13 = 9 features + 2 vel + 1 ang vel + disappear_t
PAIR_IN = 2 * FEATURE_DIM + 6            # 24 = concat([x_i, x_j, v_i, v_j, w_i, w_j])

# Rows of W1 that consume the "init" object i (x_i, v_i, w_i) and the "query" object j.
_I_ROWS = np.concatenate([np.arange(0, FEATURE_DIM),
                          np.arange(2 * FEATURE_DIM, 2 * FEATURE_DIM + 2),
                          np.arange(2 * FEATURE_DIM + 4, 2 * FEATURE_DIM + 5)])
_J_ROWS = np.concatenate([np.arange(FEATURE_DIM, 2 * FEATURE_DIM),
                          np.arange(2 * FEATURE_DIM + 2, 2 * FEATURE_DIM + 4),
                          np.arange(2 * FEATURE_DIM + 5, 2 * FEATURE_DIM + 6)])


def _fused_euler_kernel(t0_ref, dt_ref, ns_ref,            # SMEM per-interval tables [ts]
                        z0_ref, w1_ref, b1_ref, w2_ref, b2_ref,   # VMEM (weights resident)
                        out_ref,                            # [1, BN, 13] block at time k
                        state_ref,                           # VMEM scratch [BN, 13] (carry)
                        *, batch, n_obj, hidden, gravity_over_mass, acceleration_clip):
    f32 = jnp.float32
    B, N, H = batch, n_obj, hidden
    BN = B * N
    k = pl.program_id(0)

    @pl.when(k == 0)
    def _():
        state_ref[...] = z0_ref[...]

    # Weight blocks have constant index_maps -> DMA'd once, VMEM-resident afterwards.
    w1 = w1_ref[...]          # [12, 2H]  (W1_i | W1_j merged)
    b1 = b1_ref[...]          # [1, H]
    w2 = w2_ref[...]          # [H, 3]    (1/mass and dtheta_scale pre-folded)
    b2 = b2_ref[...]          # [1, 3]

    def derivative(t, z):
        per_obj = z[:, :FEATURE_DIM + 3]                  # [BN, 12]  (x, v, w)
        vel = z[:, FEATURE_DIM:FEATURE_DIM + 2]           # [BN, 2]
        angv = z[:, FEATURE_DIM + 2:FEATURE_DIM + 3]      # [BN, 1]
        dyn = z[:, FEATURE_DIM - 3:FEATURE_DIM - 2]       # [BN, 1]
        disap = z[:, FEATURE_DIM + 3:FEATURE_DIM + 4]     # [BN, 1]

        # spring_mlp layer 1: one merged matmul, split-W1 trick (no [N,N,24] pair tensor)
        ab = jnp.dot(per_obj, w1, preferred_element_type=f32,
                     precision=lax.Precision.HIGHEST)      # [BN, 2H]
        a3 = ab[:, :H].reshape(B, N, H)                    # contribution as object "i"
        bq3 = (ab[:, H:] + b1).reshape(B, N, H)            # contribution as object "j"

        dm3 = (t < disap).astype(f32).reshape(B, N, 1)     # [B, i, 1] disappear mask

        # masks fused with the sum over i, unrolled (no 4-D intermediate, no XLU reduce)
        col = lax.broadcasted_iota(jnp.int32, (1, N, 1), 1)
        hbar3 = jnp.zeros((B, N, H), f32)
        cnt3 = jnp.zeros((B, N, 1), f32)
        for i in range(N):                                 # static unroll, N small
            w_i = dm3[:, i:i + 1, :] * (col != i).astype(f32)     # [B, N, 1]
            h_i = jnp.maximum(a3[:, i:i + 1, :] + bq3, 0.0)       # [B, N, H]
            hbar3 = hbar3 + w_i * h_i
            cnt3 = cnt3 + w_i
        hbar = hbar3.reshape(BN, H)
        cnt = cnt3.reshape(BN, 1)

        # spring_mlp layer 2 on the already-reduced hidden state (scales pre-folded).
        pf = (jnp.dot(hbar, w2, preferred_element_type=f32,
                      precision=lax.Precision.HIGHEST) + cnt * b2)  # [BN, 3]

        dxdt = vel * dyn
        dthetadt = angv * dyn
        acc_x = pf[:, 0:1] * dyn
        acc_y = (pf[:, 1:2] + gravity_over_mass) * dyn
        if acceleration_clip > 0:
            # dead-zone semantics (zero small accelerations), matching the reference
            acc_x = acc_x * (jnp.abs(acc_x) > acceleration_clip).astype(f32)
            acc_y = acc_y * (jnp.abs(acc_y) > acceleration_clip).astype(f32)
        not_ball = (jnp.abs(z[:, 2:3]) > 1e-5).astype(f32)
        dangv = pf[:, 2:3] * dyn * not_ball

        zeros1 = jnp.zeros((BN, 1), f32)
        zeros5 = jnp.zeros((BN, FEATURE_DIM - 4), f32)
        # columns: [dx, dy, 0, dtheta, 0*5, ax, ay, dw, 0]
        return jnp.concatenate(
            [dxdt, zeros1, dthetadt, zeros5, acc_x, acc_y, dangv, zeros1], axis=-1)

    @pl.when(k > 0)
    def _():
        t0 = t0_ref[k]          # start time of the interval ending at output index k
        dt = dt_ref[k]
        n = ns_ref[k]           # dynamic substep count

        def substep(s, z):
            t = t0 + s.astype(f32) * dt
            return z + dt * derivative(t, z)

        # state carried in registers across substeps; one VMEM write per interval
        state_ref[...] = lax.fori_loop(0, n, substep, state_ref[...])

    out_ref[0] = state_ref[...]


@functools.partial(jax.jit, static_argnames=("step_size", "mass", "dtheta_scale",
                                              "gravity", "acceleration_clip"))
def neural_ode_forward_pallas(z0, disappear_time, t, params, *, step_size=1.0 / 1200.0,
                              mass=0.1, dtheta_scale=100.0, gravity=1.0 / 60.0,
                              acceleration_clip=0):
    """NeuralODEModel.forward (use_adjoint=False): euler odeint + permute + disappear mask."""
    w1, b1, w2, b2 = params
    B, N, _ = z0.shape
    BN = B * N
    H = w1.shape[1]
    ts = t.shape[1]

    t_row = t[0, :].astype(jnp.float32)                                 # t = t[0, :]
    z_full = jnp.concatenate([z0, disappear_time], axis=-1).reshape(BN, STATE_DIM)

    # Split + merge W1 once per forward; fold 1/mass and dtheta_scale into layer 2.
    w1_cat = jnp.concatenate([w1[_I_ROWS], w1[_J_ROWS]], axis=1).astype(jnp.float32)
    scale = jnp.array([[1.0, 1.0, dtheta_scale]], jnp.float32) * (1.0 / mass)
    w2_eff = (w2 * scale).astype(jnp.float32)
    b2_eff = (b2 * scale).astype(jnp.float32)

    # Per-interval tables (index k = interval ending at output time k; k=0 is a dummy).
    # TODO(synk): torchdiffeq's fixed-grid Euler interpolates at output times when the
    # interval is not an integer multiple of step_size; here each interval is evenly
    # subdivided (identical result when it is a multiple, as in the demo below).
    diffs = t_row[1:] - t_row[:-1]                                      # [ts-1]
    nsub = jnp.maximum(jnp.round(diffs / step_size), 1.0).astype(jnp.int32)
    dts = diffs / nsub.astype(jnp.float32)
    t0_full = jnp.concatenate([jnp.zeros((1,), jnp.float32), t_row[:-1]])
    dt_full = jnp.concatenate([jnp.zeros((1,), jnp.float32), dts])
    ns_full = jnp.concatenate([jnp.zeros((1,), jnp.int32), nsub])

    kernel = functools.partial(
        _fused_euler_kernel, batch=B, n_obj=N, hidden=H,
        gravity_over_mass=gravity / mass, acceleration_clip=acceleration_clip)

    traj = pl.pallas_call(
        kernel,
        out_shape=jax.ShapeDtypeStruct((ts, BN, STATE_DIM), jnp.float32),
        grid_spec=pltpu.PrefetchScalarGridSpec(
            num_scalar_prefetch=0,
            grid=(ts,),
            in_specs=[
                pl.BlockSpec(memory_space=pltpu.MemorySpace.SMEM),      # t0 per interval
                pl.BlockSpec(memory_space=pltpu.MemorySpace.SMEM),      # dt per interval
                pl.BlockSpec(memory_space=pltpu.MemorySpace.SMEM),      # n_sub per interval
                pl.BlockSpec((BN, STATE_DIM), lambda k: (0, 0)),        # z0
                pl.BlockSpec(w1_cat.shape, lambda k: (0, 0)),           # W1 (merged)
                pl.BlockSpec(b1.shape, lambda k: (0, 0)),               # b1
                pl.BlockSpec(w2_eff.shape, lambda k: (0, 0)),           # W2 (scaled)
                pl.BlockSpec(b2_eff.shape, lambda k: (0, 0)),           # b2 (scaled)
            ],
            out_specs=pl.BlockSpec((1, BN, STATE_DIM), lambda k: (k, 0, 0)),
            scratch_shapes=[pltpu.VMEM((BN, STATE_DIM), jnp.float32)],  # resident z carry
        ),
        compiler_params=pltpu.CompilerParams(dimension_semantics=("arbitrary",)),
    )(t0_full, dt_full, ns_full, z_full, w1_cat, b1.astype(jnp.float32), w2_eff, b2_eff)

    res = traj.reshape(ts, B, N, STATE_DIM).transpose(1, 0, 2, 3)       # permute(1,0,2,3)
    rng = (jnp.arange(ts, dtype=jnp.float32) / 10.0)[None, :, None, None]
    dmask = (rng < disappear_time[:, None, :, :]).astype(res.dtype)
    return res * dmask


# ----------------------------- pure-JAX reference --------------------------------------
@functools.partial(jax.jit,
                   static_argnames=("mass", "dtheta_scale", "gravity", "acceleration_clip"))
def odefunc_ref(t, z, params, *, mass=0.1, dtheta_scale=100.0,
                gravity=1.0 / 60.0, acceleration_clip=0):
    """Naive pairwise ODE derivative (matches the PyTorch ODEFunc)."""
    w1, b1, w2, b2 = params
    B, N, _ = z.shape
    hi = lax.Precision.HIGHEST
    feats = z[..., :FEATURE_DIM]
    vel = z[..., FEATURE_DIM:FEATURE_DIM + 2]
    angv = z[..., FEATURE_DIM + 2:FEATURE_DIM + 3]
    dyn = z[..., FEATURE_DIM - 3:FEATURE_DIM - 2]
    disap = z[..., FEATURE_DIM + 3]

    per_obj = jnp.concatenate([feats, vel, angv], axis=-1)
    ip = jnp.broadcast_to(per_obj[:, :, None, :], (B, N, N, FEATURE_DIM + 3))
    qp = jnp.broadcast_to(per_obj[:, None, :, :], (B, N, N, FEATURE_DIM + 3))
    pair = jnp.concatenate(
        [ip[..., :FEATURE_DIM], qp[..., :FEATURE_DIM],
         ip[..., FEATURE_DIM:FEATURE_DIM + 2], qp[..., FEATURE_DIM:FEATURE_DIM + 2],
         ip[..., FEATURE_DIM + 2:], qp[..., FEATURE_DIM + 2:]], axis=-1)
    h = jnp.maximum(jnp.dot(pair, w1, precision=hi) + b1, 0.0)
    pf = jnp.dot(h, w2, precision=hi) + b2                               # [B, i, j, 3]

    eye = (1.0 - jnp.eye(N, dtype=jnp.float32))[None, :, :, None]
    dmask = (t < disap).astype(jnp.float32)[:, :, None, None]
    pf = pf * eye * dmask / mass

    dxdt = vel * dyn
    dthetadt = angv * dyn
    acc = pf[..., :2].sum(axis=1)
    acc = acc.at[..., 1].add(gravity / mass)
    acc = acc * dyn
    if acceleration_clip > 0:
        acc = acc * (jnp.abs(acc) > acceleration_clip).astype(jnp.float32)
    dangv = pf[..., 2:3].sum(axis=1) * dtheta_scale * dyn
    dangv = dangv * (jnp.abs(feats[..., 2:3]) > 1e-5).astype(jnp.float32)

    return jnp.concatenate(
        [dxdt, jnp.zeros_like(z[..., 2:3]), dthetadt,
         jnp.zeros_like(z[..., 4:FEATURE_DIM]), acc, dangv,
         jnp.zeros_like(z[..., FEATURE_DIM + 3:])], axis=-1)


def neural_ode_forward_ref(z0, disappear_time, t, params, *, step_size=1.0 / 1200.0,
                           **ode_kwargs):
    """Host-driven Euler loop over the naive pairwise derivative (reference)."""
    t_row = np.asarray(t)[0]
    ts = int(t_row.shape[0])
    z = jnp.concatenate([z0, disappear_time], axis=-1)
    outs = [z]
    for k in range(ts - 1):
        t0, t1 = float(t_row[k]), float(t_row[k + 1])
        n_sub = max(1, int(round((t1 - t0) / step_size)))
        dt = (t1 - t0) / n_sub
        for s in range(n_sub):
            z = z + dt * odefunc_ref(t0 + s * dt, z, params, **ode_kwargs)
        outs.append(z)
    res = jnp.stack(outs, axis=1)                                        # [B, ts, N, 13]
    rng = (jnp.arange(ts, dtype=jnp.float32) / 10.0)[None, :, None, None]
    dmask = (rng < disappear_time[:, None, :, :]).astype(res.dtype)
    return res * dmask


if __name__ == "__main__":
    B, N, H = 2, 8, 32
    TS = 4

    key = jax.random.PRNGKey(0)
    kz, kd, k1, k2, k3, k4 = jax.random.split(key, 6)

    z0 = jax.random.normal(kz, (B, N, STATE_DIM - 1), dtype=jnp.float32)       # [2, 8, 12]
    disappear_time = jax.random.uniform(kd, (B, N, 1), dtype=jnp.float32,
                                        minval=0.05, maxval=0.6)
    t = jnp.broadcast_to(jnp.arange(TS, dtype=jnp.float32) * 0.1, (B, TS))     # uses t[0, :]

    w1 = 0.01 * jax.random.normal(k1, (PAIR_IN, H), dtype=jnp.float32)
    b1 = 0.01 * jax.random.normal(k2, (1, H), dtype=jnp.float32)
    w2 = 0.01 * jax.random.normal(k3, (H, 3), dtype=jnp.float32)
    b2 = 0.01 * jax.random.normal(k4, (1, 3), dtype=jnp.float32)
    params = (w1, b1, w2, b2)

    for step_size in (0.05, 0.025):    # 2 and 4 Euler substeps per 0.1 interval
        out = jax.block_until_ready(
            neural_ode_forward_pallas(z0, disappear_time, t, params, step_size=step_size))
        ref = jax.block_until_ready(
            neural_ode_forward_ref(z0, disappear_time, t, params, step_size=step_size))
        assert out.shape == (B, TS, N, STATE_DIM)
        err = float(jnp.max(jnp.abs(out - ref)) / (jnp.max(jnp.abs(ref)) + 1e-6))
        assert err < 1e-3, f"forward relative error too large (step={step_size}): {err}"

    print("KERNEL_OK")
</pallas_src>

<mosaic_0001>
module attributes {stable_mosaic.version = 11 : i64} {
  func.func @_fused_euler_kernel(%arg0: i32, %arg1: memref<4xf32, #tpu.memory_space<smem>>, %arg2: memref<4xf32, #tpu.memory_space<smem>>, %arg3: memref<4xi32, #tpu.memory_space<smem>>, %arg4: memref<16x13xf32, #tpu.memory_space<vmem>>, %arg5: memref<12x64xf32, #tpu.memory_space<vmem>>, %arg6: memref<1x32xf32, #tpu.memory_space<vmem>>, %arg7: memref<32x3xf32, #tpu.memory_space<vmem>>, %arg8: memref<1x3xf32, #tpu.memory_space<vmem>>, %arg9: memref<1x16x13xf32, #tpu.memory_space<vmem>>, %arg10: memref<16x13xf32, #tpu.memory_space<vmem>>) attributes {dimension_semantics = [#tpu.dimension_semantics<arbitrary>], iteration_bounds = array<i64: 4>, scalar_prefetch = 0 : i64, scratch_operands = 1 : i64, tpu.core_type = #tpu.core_type<tc>, window_params = [{transform_indices = @transform_0, window_bounds = array<i64: 4>}, {transform_indices = @transform_1, window_bounds = array<i64: 4>}, {transform_indices = @transform_2, window_bounds = array<i64: 4>}, {pipeline_mode = #tpu.pipeline_mode<synchronous>, transform_indices = @transform_3, window_bounds = array<i64: 16, 13>}, {pipeline_mode = #tpu.pipeline_mode<synchronous>, transform_indices = @transform_4, window_bounds = array<i64: 12, 64>}, {pipeline_mode = #tpu.pipeline_mode<synchronous>, transform_indices = @transform_5, window_bounds = array<i64: 1, 32>}, {pipeline_mode = #tpu.pipeline_mode<synchronous>, transform_indices = @transform_6, window_bounds = array<i64: 32, 3>}, {pipeline_mode = #tpu.pipeline_mode<synchronous>, transform_indices = @transform_7, window_bounds = array<i64: 1, 3>}, {transform_indices = @transform_8, window_bounds = array<i64: 1, 16, 13>}]} {
    %c0_i32 = arith.constant 0 : i32
    %0 = arith.cmpi eq, %arg0, %c0_i32 : i32
    %1 = arith.extui %0 : i1 to i32
    %c0_i32_0 = arith.constant 0 : i32
    %2 = arith.cmpi ne, %1, %c0_i32_0 : i32
    scf.if %2 {
      %c0_15 = arith.constant 0 : index
      %c0_16 = arith.constant 0 : index
      %14 = vector.load %arg4[%c0_15, %c0_16] : memref<16x13xf32, #tpu.memory_space<vmem>>, vector<16x13xf32>
      %c0_17 = arith.constant 0 : index
      %c0_18 = arith.constant 0 : index
      %15 = vector.load %arg10[%c0_17, %c0_18] : memref<16x13xf32, #tpu.memory_space<vmem>>, vector<16x13xf32>
      tpu.vector_store %arg10[%c0_17, %c0_18], %14 {strides = array<i32>} : memref<16x13xf32, #tpu.memory_space<vmem>>, vector<16x13xf32>,
    } else {
    }
    %c0 = arith.constant 0 : index
    %c0_1 = arith.constant 0 : index
    %3 = vector.load %arg5[%c0, %c0_1] : memref<12x64xf32, #tpu.memory_space<vmem>>, vector<12x64xf32>
    %c0_2 = arith.constant 0 : index
    %c0_3 = arith.constant 0 : index
    %4 = vector.load %arg6[%c0_2, %c0_3] : memref<1x32xf32, #tpu.memory_space<vmem>>, vector<1x32xf32>
    %c0_4 = arith.constant 0 : index
    %c0_5 = arith.constant 0 : index
    %5 = vector.load %arg7[%c0_4, %c0_5] : memref<32x3xf32, #tpu.memory_space<vmem>>, vector<32x3xf32>
    %c0_6 = arith.constant 0 : index
    %c0_7 = arith.constant 0 : index
    %6 = vector.load %arg8[%c0_6, %c0_7] : memref<1x3xf32, #tpu.memory_space<vmem>>, vector<1x3xf32>
    %c0_i32_8 = arith.constant 0 : i32
    %7 = arith.cmpi sgt, %arg0, %c0_i32_8 : i32
    %8 = arith.extui %7 : i1 to i32
    %c0_i32_9 = arith.constant 0 : i32
    %9 = arith.cmpi ne, %8, %c0_i32_9 : i32
    scf.if %9 {
      %14 = arith.index_cast %arg0 : i32 to index
      %15 = memref.load %arg1[%14] : memref<4xf32, #tpu.memory_space<smem>>
      %16 = arith.index_cast %arg0 : i32 to index
      %17 = memref.load %arg2[%16] : memref<4xf32, #tpu.memory_space<smem>>
      %18 = arith.index_cast %arg0 : i32 to index
      %19 = memref.load %arg3[%18] : memref<4xi32, #tpu.memory_space<smem>>
      %c0_15 = arith.constant 0 : index
      %c0_16 = arith.constant 0 : index
      %20 = vector.load %arg10[%c0_15, %c0_16] : memref<16x13xf32, #tpu.memory_space<vmem>>, vector<16x13xf32>
      %c0_i32_17 = arith.constant 0 : i32
      %21 = arith.subi %19, %c0_i32_17 : i32
      %22 = arith.addi %c0_i32_17, %21 : i32
      %c1_i32 = arith.constant 1 : i32
      %23 = scf.for %arg11 = %c0_i32_17 to %22 step %c1_i32 iter_args(%arg12 = %20) -> (vector<16x13xf32>)  : i32 {
        %25 = arith.sitofp %arg11 : i32 to f32
        %26 = arith.mulf %25, %17 : f32
        %27 = arith.addf %15, %26 : f32
        %28 = vector.extract_strided_slice %arg12 {offsets = [0, 0], sizes = [16, 12], strides = [1, 1]} : vector<16x13xf32> to vector<16x12xf32>
        %29 = vector.extract_strided_slice %arg12 {offsets = [0, 9], sizes = [16, 2], strides = [1, 1]} : vector<16x13xf32> to vector<16x2xf32>
        %30 = vector.extract_strided_slice %arg12 {offsets = [0, 11], sizes = [16, 1], strides = [1, 1]} : vector<16x13xf32> to vector<16x1xf32>
        %31 = vector.extract_strided_slice %arg12 {offsets = [0, 6], sizes = [16, 1], strides = [1, 1]} : vector<16x13xf32> to vector<16x1xf32>
        %32 = vector.extract_strided_slice %arg12 {offsets = [0, 12], sizes = [16, 1], strides = [1, 1]} : vector<16x13xf32> to vector<16x1xf32>
        %cst = arith.constant dense<0.000000e+00> : vector<16x64xf32>
        %33 = tpu.matmul %28, %3, %cst {dimension_numbers = #tpu.dot_dimension_numbers<[1], [0], [0], [1], [0, 0, 1, 1], [], []>, precision = #tpu.contract_precision<fp32>} : vector<16x12xf32>, vector<12x64xf32>, vector<16x64xf32> -> vector<16x64xf32>
        %34 = vector.extract_strided_slice %33 {offsets = [0, 0], sizes = [16, 32], strides = [1, 1]} : vector<16x64xf32> to vector<16x32xf32>
        %35 = vector.shape_cast %34 : vector<16x32xf32> to vector<2x8x32xf32>
        %36 = vector.extract_strided_slice %33 {offsets = [0, 32], sizes = [16, 32], strides = [1, 1]} : vector<16x64xf32> to vector<16x32xf32>
        %37 = vector.broadcast %4 : vector<1x32xf32> to vector<16x32xf32>
        %38 = arith.addf %36, %37 : vector<16x32xf32>
        %39 = vector.shape_cast %38 : vector<16x32xf32> to vector<2x8x32xf32>
        %40 = vector.broadcast %27 : f32 to vector<16x1xf32>
        %41 = arith.cmpf olt, %40, %32 : vector<16x1xf32>
        %42 = arith.extui %41 : vector<16x1xi1> to vector<16x1xi32>
        %43 = arith.sitofp %42 : vector<16x1xi32> to vector<16x1xf32>
        %44 = vector.shape_cast %43 : vector<16x1xf32> to vector<2x8x1xf32>
        %45 = tpu.iota {dimensions = array<i32: 1>} : vector<1x8x1xi32>
        %cst_20 = arith.constant 0.000000e+00 : f32
        %46 = vector.broadcast %cst_20 : f32 to vector<2x8x32xf32>
        %cst_21 = arith.constant 0.000000e+00 : f32
        %47 = vector.broadcast %cst_21 : f32 to vector<2x8x1xf32>
        %48 = vector.extract_strided_slice %44 {offsets = [0, 0, 0], sizes = [2, 1, 1], strides = [1, 1, 1]} : vector<2x8x1xf32> to vector<2x1x1xf32>
        %c0_i32_22 = arith.constant 0 : i32
        %49 = vector.broadcast %c0_i32_22 : i32 to vector<1x8x1xi32>
        %50 = arith.cmpi ne, %45, %49 : vector<1x8x1xi32>
        %51 = arith.extui %50 : vector<1x8x1xi1> to vector<1x8x1xi32>
        %52 = arith.sitofp %51 : vector<1x8x1xi32> to vector<1x8x1xf32>
        %53 = vector.broadcast %48 : vector<2x1x1xf32> to vector<2x8x1xf32>
        %54 = vector.broadcast %52 : vector<1x8x1xf32> to vector<2x8x1xf32>
        %55 = arith.mulf %53, %54 : vector<2x8x1xf32>
        %56 = vector.extract_strided_slice %35 {offsets = [0, 0, 0], sizes = [2, 1, 32], strides = [1, 1, 1]} : vector<2x8x32xf32> to vector<2x1x32xf32>
        %57 = vector.broadcast %56 : vector<2x1x32xf32> to vector<2x8x32xf32>
        %58 = arith.addf %57, %39 : vector<2x8x32xf32>
        %cst_23 = arith.constant 0.000000e+00 : f32
        %59 = vector.broadcast %cst_23 : f32 to vector<2x8x32xf32>
        %60 = arith.maximumf %58, %59 : vector<2x8x32xf32>
        %61 = vector.broadcast %55 : vector<2x8x1xf32> to vector<2x8x32xf32>
        %62 = arith.mulf %61, %60 : vector<2x8x32xf32>
        %63 = arith.addf %46, %62 : vector<2x8x32xf32>
        %64 = arith.addf %47, %55 : vector<2x8x1xf32>
        %65 = vector.extract_strided_slice %44 {offsets = [0, 1, 0], sizes = [2, 1, 1], strides = [1, 1, 1]} : vector<2x8x1xf32> to vector<2x1x1xf32>
        %c1_i32_24 = arith.constant 1 : i32
        %66 = vector.broadcast %c1_i32_24 : i32 to vector<1x8x1xi32>
        %67 = arith.cmpi ne, %45, %66 : vector<1x8x1xi32>
        %68 = arith.extui %67 : vector<1x8x1xi1> to vector<1x8x1xi32>
        %69 = arith.sitofp %68 : vector<1x8x1xi32> to vector<1x8x1xf32>
        %70 = vector.broadcast %65 : vector<2x1x1xf32> to vector<2x8x1xf32>
        %71 = vector.broadcast %69 : vector<1x8x1xf32> to vector<2x8x1xf32>
        %72 = arith.mulf %70, %71 : vector<2x8x1xf32>
        %73 = vector.extract_strided_slice %35 {offsets = [0, 1, 0], sizes = [2, 1, 32], strides = [1, 1, 1]} : vector<2x8x32xf32> to vector<2x1x32xf32>
        %74 = vector.broadcast %73 : vector<2x1x32xf32> to vector<2x8x32xf32>
        %75 = arith.addf %74, %39 : vector<2x8x32xf32>
        %cst_25 = arith.constant 0.000000e+00 : f32
        %76 = vector.broadcast %cst_25 : f32 to vector<2x8x32xf32>
        %77 = arith.maximumf %75, %76 : vector<2x8x32xf32>
        %78 = vector.broadcast %72 : vector<2x8x1xf32> to vector<2x8x32xf32>
        %79 = arith.mulf %78, %77 : vector<2x8x32xf32>
        %80 = arith.addf %63, %79 : vector<2x8x32xf32>
        %81 = arith.addf %64, %72 : vector<2x8x1xf32>
        %82 = vector.extract_strided_slice %44 {offsets = [0, 2, 0], sizes = [2, 1, 1], strides = [1, 1, 1]} : vector<2x8x1xf32> to vector<2x1x1xf32>
        %c2_i32 = arith.constant 2 : i32
        %83 = vector.broadcast %c2_i32 : i32 to vector<1x8x1xi32>
        %84 = arith.cmpi ne, %45, %83 : vector<1x8x1xi32>
        %85 = arith.extui %84 : vector<1x8x1xi1> to vector<1x8x1xi32>
        %86 = arith.sitofp %85 : vector<1x8x1xi32> to vector<1x8x1xf32>
        %87 = vector.broadcast %82 : vector<2x1x1xf32> to vector<2x8x1xf32>
        %88 = vector.broadcast %86 : vector<1x8x1xf32> to vector<2x8x1xf32>
        %89 = arith.mulf %87, %88 : vector<2x8x1xf32>
        %90 = vector.extract_strided_slice %35 {offsets = [0, 2, 0], sizes = [2, 1, 32], strides = [1, 1, 1]} : vector<2x8x32xf32> to vector<2x1x32xf32>
        %91 = vector.broadcast %90 : vector<2x1x32xf32> to vector<2x8x32xf32>
        %92 = arith.addf %91, %39 : vector<2x8x32xf32>
        %cst_26 = arith.constant 0.000000e+00 : f32
        %93 = vector.broadcast %cst_26 : f32 to vector<2x8x32xf32>
        %94 = arith.maximumf %92, %93 : vector<2x8x32xf32>
        %95 = vector.broadcast %89 : vector<2x8x1xf32> to vector<2x8x32xf32>
        %96 = arith.mulf %95, %94 : vector<2x8x32xf32>
        %97 = arith.addf %80, %96 : vector<2x8x32xf32>
        %98 = arith.addf %81, %89 : vector<2x8x1xf32>
        %99 = vector.extract_strided_slice %44 {offsets = [0, 3, 0], sizes = [2, 1, 1], strides = [1, 1, 1]} : vector<2x8x1xf32> to vector<2x1x1xf32>
        %c3_i32 = arith.constant 3 : i32
        %100 = vector.broadcast %c3_i32 : i32 to vector<1x8x1xi32>
        %101 = arith.cmpi ne, %45, %100 : vector<1x8x1xi32>
        %102 = arith.extui %101 : vector<1x8x1xi1> to vector<1x8x1xi32>
        %103 = arith.sitofp %102 : vector<1x8x1xi32> to vector<1x8x1xf32>
        %104 = vector.broadcast %99 : vector<2x1x1xf32> to vector<2x8x1xf32>
        %105 = vector.broadcast %103 : vector<1x8x1xf32> to vector<2x8x1xf32>
        %106 = arith.mulf %104, %105 : vector<2x8x1xf32>
        %107 = vector.extract_strided_slice %35 {offsets = [0, 3, 0], sizes = [2, 1, 32], strides = [1, 1, 1]} : vector<2x8x32xf32> to vector<2x1x32xf32>
        %108 = vector.broadcast %107 : vector<2x1x32xf32> to vector<2x8x32xf32>
        %109 = arith.addf %108, %39 : vector<2x8x32xf32>
        %cst_27 = arith.constant 0.000000e+00 : f32
        %110 = vector.broadcast %cst_27 : f32 to vector<2x8x32xf32>
        %111 = arith.maximumf %109, %110 : vector<2x8x32xf32>
        %112 = vector.broadcast %106 : vector<2x8x1xf32> to vector<2x8x32xf32>
        %113 = arith.mulf %112, %111 : vector<2x8x32xf32>
        %114 = arith.addf %97, %113 : vector<2x8x32xf32>
        %115 = arith.addf %98, %106 : vector<2x8x1xf32>
        %116 = vector.extract_strided_slice %44 {offsets = [0, 4, 0], sizes = [2, 1, 1], strides = [1, 1, 1]} : vector<2x8x1xf32> to vector<2x1x1xf32>
        %c4_i32 = arith.constant 4 : i32
        %117 = vector.broadcast %c4_i32 : i32 to vector<1x8x1xi32>
        %118 = arith.cmpi ne, %45, %117 : vector<1x8x1xi32>
        %119 = arith.extui %118 : vector<1x8x1xi1> to vector<1x8x1xi32>
        %120 = arith.sitofp %119 : vector<1x8x1xi32> to vector<1x8x1xf32>
        %121 = vector.broadcast %116 : vector<2x1x1xf32> to vector<2x8x1xf32>
        %122 = vector.broadcast %120 : vector<1x8x1xf32> to vector<2x8x1xf32>
        %123 = arith.mulf %121, %122 : vector<2x8x1xf32>
        %124 = vector.extract_strided_slice %35 {offsets = [0, 4, 0], sizes = [2, 1, 32], strides = [1, 1, 1]} : vector<2x8x32xf32> to vector<2x1x32xf32>
        %125 = vector.broadcast %124 : vector<2x1x32xf32> to vector<2x8x32xf32>
        %126 = arith.addf %125, %39 : vector<2x8x32xf32>
        %cst_28 = arith.constant 0.000000e+00 : f32
        %127 = vector.broadcast %cst_28 : f32 to vector<2x8x32xf32>
        %128 = arith.maximumf %126, %127 : vector<2x8x32xf32>
        %129 = vector.broadcast %123 : vector<2x8x1xf32> to vector<2x8x32xf32>
        %130 = arith.mulf %129, %128 : vector<2x8x32xf32>
        %131 = arith.addf %114, %130 : vector<2x8x32xf32>
        %132 = arith.addf %115, %123 : vector<2x8x1xf32>
        %133 = vector.extract_strided_slice %44 {offsets = [0, 5, 0], sizes = [2, 1, 1], strides = [1, 1, 1]} : vector<2x8x1xf32> to vector<2x1x1xf32>
        %c5_i32 = arith.constant 5 : i32
        %134 = vector.broadcast %c5_i32 : i32 to vector<1x8x1xi32>
        %135 = arith.cmpi ne, %45, %134 : vector<1x8x1xi32>
        %136 = arith.extui %135 : vector<1x8x1xi1> to vector<1x8x1xi32>
        %137 = arith.sitofp %136 : vector<1x8x1xi32> to vector<1x8x1xf32>
        %138 = vector.broadcast %133 : vector<2x1x1xf32> to vector<2x8x1xf32>
        %139 = vector.broadcast %137 : vector<1x8x1xf32> to vector<2x8x1xf32>
        %140 = arith.mulf %138, %139 : vector<2x8x1xf32>
        %141 = vector.extract_strided_slice %35 {offsets = [0, 5, 0], sizes = [2, 1, 32], strides = [1, 1, 1]} : vector<2x8x32xf32> to vector<2x1x32xf32>
        %142 = vector.broadcast %141 : vector<2x1x32xf32> to vector<2x8x32xf32>
        %143 = arith.addf %142, %39 : vector<2x8x32xf32>
        %cst_29 = arith.constant 0.000000e+00 : f32
        %144 = vector.broadcast %cst_29 : f32 to vector<2x8x32xf32>
        %145 = arith.maximumf %143, %144 : vector<2x8x32xf32>
        %146 = vector.broadcast %140 : vector<2x8x1xf32> to vector<2x8x32xf32>
        %147 = arith.mulf %146, %145 : vector<2x8x32xf32>
        %148 = arith.addf %131, %147 : vector<2x8x32xf32>
        %149 = arith.addf %132, %140 : vector<2x8x1xf32>
        %150 = vector.extract_strided_slice %44 {offsets = [0, 6, 0], sizes = [2, 1, 1], strides = [1, 1, 1]} : vector<2x8x1xf32> to vector<2x1x1xf32>
        %c6_i32 = arith.constant 6 : i32
        %151 = vector.broadcast %c6_i32 : i32 to vector<1x8x1xi32>
        %152 = arith.cmpi ne, %45, %151 : vector<1x8x1xi32>
        %153 = arith.extui %152 : vector<1x8x1xi1> to vector<1x8x1xi32>
        %154 = arith.sitofp %153 : vector<1x8x1xi32> to vector<1x8x1xf32>
        %155 = vector.broadcast %150 : vector<2x1x1xf32> to vector<2x8x1xf32>
        %156 = vector.broadcast %154 : vector<1x8x1xf32> to vector<2x8x1xf32>
        %157 = arith.mulf %155, %156 : vector<2x8x1xf32>
        %158 = vector.extract_strided_slice %35 {offsets = [0, 6, 0], sizes = [2, 1, 32], strides = [1, 1, 1]} : vector<2x8x32xf32> to vector<2x1x32xf32>
        %159 = vector.broadcast %158 : vector<2x1x32xf32> to vector<2x8x32xf32>
        %160 = arith.addf %159, %39 : vector<2x8x32xf32>
        %cst_30 = arith.constant 0.000000e+00 : f32
        %161 = vector.broadcast %cst_30 : f32 to vector<2x8x32xf32>
        %162 = arith.maximumf %160, %161 : vector<2x8x32xf32>
        %163 = vector.broadcast %157 : vector<2x8x1xf32> to vector<2x8x32xf32>
        %164 = arith.mulf %163, %162 : vector<2x8x32xf32>
        %165 = arith.addf %148, %164 : vector<2x8x32xf32>
        %166 = arith.addf %149, %157 : vector<2x8x1xf32>
        %167 = vector.extract_strided_slice %44 {offsets = [0, 7, 0], sizes = [2, 1, 1], strides = [1, 1, 1]} : vector<2x8x1xf32> to vector<2x1x1xf32>
        %c7_i32 = arith.constant 7 : i32
        %168 = vector.broadcast %c7_i32 : i32 to vector<1x8x1xi32>
        %169 = arith.cmpi ne, %45, %168 : vector<1x8x1xi32>
        %170 = arith.extui %169 : vector<1x8x1xi1> to vector<1x8x1xi32>
        %171 = arith.sitofp %170 : vector<1x8x1xi32> to vector<1x8x1xf32>
        %172 = vector.broadcast %167 : vector<2x1x1xf32> to vector<2x8x1xf32>
        %173 = vector.broadcast %171 : vector<1x8x1xf32> to vector<2x8x1xf32>
        %174 = arith.mulf %172, %173 : vector<2x8x1xf32>
        %175 = vector.extract_strided_slice %35 {offsets = [0, 7, 0], sizes = [2, 1, 32], strides = [1, 1, 1]} : vector<2x8x32xf32> to vector<2x1x32xf32>
        %176 = vector.broadcast %175 : vector<2x1x32xf32> to vector<2x8x32xf32>
        %177 = arith.addf %176, %39 : vector<2x8x32xf32>
        %cst_31 = arith.constant 0.000000e+00 : f32
        %178 = vector.broadcast %cst_31 : f32 to vector<2x8x32xf32>
        %179 = arith.maximumf %177, %178 : vector<2x8x32xf32>
        %180 = vector.broadcast %174 : vector<2x8x1xf32> to vector<2x8x32xf32>
        %181 = arith.mulf %180, %179 : vector<2x8x32xf32>
        %182 = arith.addf %165, %181 : vector<2x8x32xf32>
        %183 = arith.addf %166, %174 : vector<2x8x1xf32>
        %184 = vector.shape_cast %182 : vector<2x8x32xf32> to vector<16x32xf32>
        %185 = vector.shape_cast %183 : vector<2x8x1xf32> to vector<16x1xf32>
        %cst_32 = arith.constant dense<0.000000e+00> : vector<16x3xf32>
        %186 = tpu.matmul %184, %5, %cst_32 {dimension_numbers = #tpu.dot_dimension_numbers<[1], [0], [0], [1], [0, 0, 1, 1], [], []>, precision = #tpu.contract_precision<fp32>} : vector<16x32xf32>, vector<32x3xf32>, vector<16x3xf32> -> vector<16x3xf32>
        %187 = vector.broadcast %185 : vector<16x1xf32> to vector<16x3xf32>
        %188 = vector.broadcast %6 : vector<1x3xf32> to vector<16x3xf32>
        %189 = arith.mulf %187, %188 : vector<16x3xf32>
        %190 = arith.addf %186, %189 : vector<16x3xf32>
        %191 = vector.broadcast %31 : vector<16x1xf32> to vector<16x2xf32>
        %192 = arith.mulf %29, %191 : vector<16x2xf32>
        %193 = arith.mulf %30, %31 : vector<16x1xf32>
        %194 = vector.extract_strided_slice %190 {offsets = [0, 0], sizes = [16, 1], strides = [1, 1]} : vector<16x3xf32> to vector<16x1xf32>
        %195 = arith.mulf %194, %31 : vector<16x1xf32>
        %196 = vector.extract_strided_slice %190 {offsets = [0, 1], sizes = [16, 1], strides = [1, 1]} : vector<16x3xf32> to vector<16x1xf32>
        %cst_33 = arith.constant 0.166666672 : f32
        %197 = vector.broadcast %cst_33 : f32 to vector<16x1xf32>
        %198 = arith.addf %196, %197 : vector<16x1xf32>
        %199 = arith.mulf %198, %31 : vector<16x1xf32>
        %200 = vector.extract_strided_slice %arg12 {offsets = [0, 2], sizes = [16, 1], strides = [1, 1]} : vector<16x13xf32> to vector<16x1xf32>
        %201 = math.absf %200 : vector<16x1xf32>
        %cst_34 = arith.constant 9.99999974E-6 : f32
        %202 = vector.broadcast %cst_34 : f32 to vector<16x1xf32>
        %203 = arith.cmpf ogt, %201, %202 : vector<16x1xf32>
        %204 = arith.extui %203 : vector<16x1xi1> to vector<16x1xi32>
        %205 = arith.sitofp %204 : vector<16x1xi32> to vector<16x1xf32>
        %206 = vector.extract_strided_slice %190 {offsets = [0, 2], sizes = [16, 1], strides = [1, 1]} : vector<16x3xf32> to vector<16x1xf32>
        %207 = arith.mulf %206, %31 : vector<16x1xf32>
        %208 = arith.mulf %207, %205 : vector<16x1xf32>
        %cst_35 = arith.constant 0.000000e+00 : f32
        %209 = vector.broadcast %cst_35 : f32 to vector<16x1xf32>
        %cst_36 = arith.constant 0.000000e+00 : f32
        %210 = vector.broadcast %cst_36 : f32 to vector<16x5xf32>
        %211 = tpu.concatenate %192, %209, %193, %210, %195, %199, %208, %209 in 1 : vector<16x2xf32>, vector<16x1xf32>, vector<16x1xf32>, vector<16x5xf32>, vector<16x1xf32>, vector<16x1xf32>, vector<16x1xf32>, vector<16x1xf32> -> vector<16x13xf32>
        %212 = vector.broadcast %17 : f32 to vector<16x13xf32>
        %213 = arith.mulf %212, %211 : vector<16x13xf32>
        %214 = arith.addf %arg12, %213 : vector<16x13xf32>
        scf.yield %214 : vector<16x13xf32>
      }
      %c0_18 = arith.constant 0 : index
      %c0_19 = arith.constant 0 : index
      %24 = vector.load %arg10[%c0_18, %c0_19] : memref<16x13xf32, #tpu.memory_space<vmem>>, vector<16x13xf32>
      tpu.vector_store %arg10[%c0_18, %c0_19], %23 {strides = array<i32>} : memref<16x13xf32, #tpu.memory_space<vmem>>, vector<16x13xf32>,
    } else {
    }
    %c0_10 = arith.constant 0 : index
    %c0_11 = arith.constant 0 : index
    %10 = vector.load %arg10[%c0_10, %c0_11] : memref<16x13xf32, #tpu.memory_space<vmem>>, vector<16x13xf32>
    %c0_12 = arith.constant 0 : index
    %c0_13 = arith.constant 0 : index
    %c0_14 = arith.constant 0 : index
    %11 = vector.load %arg9[%c0_12, %c0_13, %c0_14] : memref<1x16x13xf32, #tpu.memory_space<vmem>>, vector<1x16x13xf32>
    %12 = vector.shape_cast %11 : vector<1x16x13xf32> to vector<16x13xf32>
    %13 = vector.shape_cast %10 : vector<16x13xf32> to vector<1x16x13xf32>
    tpu.vector_store %arg9[%c0_12, %c0_13, %c0_14], %13 {strides = array<i32>} : memref<1x16x13xf32, #tpu.memory_space<vmem>>, vector<1x16x13xf32>,
    return
  }
  func.func @transform_0(%arg0: i32) -> i32 {
    %c0_i32 = arith.constant 0 : i32
    %c0_i32_0 = arith.constant 0 : i32
    return %c0_i32 : i32
  }
  func.func @transform_1(%arg0: i32) -> i32 {
    %c0_i32 = arith.constant 0 : i32
    %c0_i32_0 = arith.constant 0 : i32
    return %c0_i32 : i32
  }
  func.func @transform_2(%arg0: i32) -> i32 {
    %c0_i32 = arith.constant 0 : i32
    %c0_i32_0 = arith.constant 0 : i32
    return %c0_i32 : i32
  }
  func.func @transform_3(%arg0: i32) -> (i32, i32) {
    %c0_i32 = arith.constant 0 : i32
    %c0_i32_0 = arith.constant 0 : i32
    %c0_i32_1 = arith.constant 0 : i32
    return %c0_i32, %c0_i32_0 : i32, i32
  }
  func.func @transform_4(%arg0: i32) -> (i32, i32) {
    %c0_i32 = arith.constant 0 : i32
    %c0_i32_0 = arith.constant 0 : i32
    %c0_i32_1 = arith.constant 0 : i32
    return %c0_i32, %c0_i32_0 : i32, i32
  }
  func.func @transform_5(%arg0: i32) -> (i32, i32) {
    %c0_i32 = arith.constant 0 : i32
    %c0_i32_0 = arith.constant 0 : i32
    %c0_i32_1 = arith.constant 0 : i32
    return %c0_i32, %c0_i32_0 : i32, i32
  }
  func.func @transform_6(%arg0: i32) -> (i32, i32) {
    %c0_i32 = arith.constant 0 : i32
    %c0_i32_0 = arith.constant 0 : i32
    %c0_i32_1 = arith.constant 0 : i32
    return %c0_i32, %c0_i32_0 : i32, i32
  }
  func.func @transform_7(%arg0: i32) -> (i32, i32) {
    %c0_i32 = arith.constant 0 : i32
    %c0_i32_0 = arith.constant 0 : i32
    %c0_i32_1 = arith.constant 0 : i32
    return %c0_i32, %c0_i32_0 : i32, i32
  }
  func.func @transform_8(%arg0: i32) -> (i32, i32, i32) {
    %c0_i32 = arith.constant 0 : i32
    %c0_i32_0 = arith.constant 0 : i32
    %c0_i32_1 = arith.constant 0 : i32
    return %arg0, %c0_i32, %c0_i32_0 : i32, i32, i32
  }
}

</mosaic_0001>

<bundles_post_ra>
// kernel: mul.13
= control target key start
LH: loop header
LB: loop body
LE: loop exit
PB: predicated region body
PF: predicated region fallthrough
CT: control target
= control target key end

     0   :  { %s34_s0 = inlined_call_operand.vmem [shape: f32[1,3], index: 0, kind: input, shape index: {}]   ;;  %s35_s1 = inlined_call_operand.vmem [shape: f32[1,3], index: 1, kind: input, shape index: {}]   ;;  %s36_s2 = inlined_call_operand.vmem [shape: f32[1,3], index: 2, kind: output, shape index: {}]  }
   0x1   :  { %v3_v0 = vld [vmem:[%s34_s0] sm:$0x1] }
   0x2   :  { %v4_v1 = vld [vmem:[%s35_s1] sm:$0x1] }
   0x3   :  { %v7_v2 = vmul.f32 %v4_v1, %v3_v0 }
   0x5   :  { %9 = vst [vmem:[%s36_s2] sm:$0x1] %v7_v2 }

// kernel: neural_ode_forward_pallas.1
= control target key start
LH: loop header
LB: loop body
LE: loop exit
PB: predicated region body
PF: predicated region fallthrough
CT: control target
= control target key end

     0   :  { %13 = vsyncpa [#allocation4], 0  ;;  %s2986_s0 = inlined_call_operand.vmem [shape: f32[4], index: 0, kind: input, shape index: {}]   ;;  %s2987_s1 = inlined_call_operand.vmem [shape: f32[4], index: 1, kind: input, shape index: {}]   ;;  %s2988_s2 = inlined_call_operand.vmem [shape: s32[4], index: 2, kind: input, shape index: {}]   ;;  %s2989_s3 = inlined_call_operand.vmem [shape: f32[16,13], index: 3, kind: input, shape index: {}]   ;;  %s2990_s4 = inlined_call_operand.vmem [shape: f32[12,64], index: 4, kind: input, shape index: {}]   ;;  %s2991_s5 = inlined_call_operand.vmem [shape: f32[1,32], index: 5, kind: input, shape index: {}]   ;;  %s2992_s6 = inlined_call_operand.vmem [shape: f32[32,3], index: 6, kind: input, shape index: {}]   ;;  %s2993_s7 = inlined_call_operand.vmem [shape: f32[1,3], index: 7, kind: input, shape index: {}]   ;;  %s2994_s8 = inlined_call_operand.vmem [shape: f32[4,16,13], index: 8, kind: output, shape index: {}]  }
   0x1   :  { %14 = vsyncpa [#allocation6], 0  ;;  %s2545_s27 = smov 0  }
   0x2 LB: > { %s2551_s28 = sadd.s32 4294967295, %s2463_s27   ;;  %p1997_p0 = scmp.ge.s32.totalorder %s2463_s27, 1  ;;  %s2463_s27 = sphi %s2545_s27, %s20_s27  }
   0x3   : > { %p219_p1 = scmp.lt.s32.totalorder %s2463_s27, 5  ;;  %s243_s9 = sshll.u32 %s2987_s1, 4  ;;  %s244_s9 = int_to_ptr.vmem [resolvable:$true] %s243_s9 }
   0x4   : > { %p2995_p4 = scmp.eq.s32.totalorder %s2551_s28, 0  ;;  %s232_s13 = sshll.u32 %s2986_s0, 4  ;;  %s233_s13 = int_to_ptr.vmem [resolvable:$true] %s232_s13 }
   0x5   : > { %p2559_p3 = pnand %p1997_p0, %p219_p1  ;;  %s254_s16 = sshll.u32 %s2988_s2, 4  ;;  %s2578_s16 = int_to_ptr.vmem [resolvable:$true] %s254_s16 }
   0x6   : > { %s2384_s18 = scalar_lea.vmem %s244_s9, 16  ;;  %p2392_p11 = scmp.lt.s32.totalorder %s244_s9, %s244_s9 }
   0x7   : > { %s2997_s10 = scalar_select %p2559_p3, 1, 0 }
   0x8   : > { %p2301_p5 = pneg %p2559_p3  ;;  %p2385_p7 = scmp.ne.s32.totalorder %s244_s9, %s2384_s18 }
   0x9   : > { %p2393_p12 = scmp.lt.s32.totalorder %s2384_s18, %s2384_s18 }
   0xa   : > { %p2574_p6 = pnand %p2995_p4, %p2301_p5 }
   0xb   : > { %p2394_p13 = por %p2393_p12, %p2392_p11 }
   0xc   : > { %p2386_p8 = pneg %p2574_p6 }
   0xe   : > { %p2387_p9 = pnand %p2386_p8, %p2385_p7 }
  0x10   : > { %p2388_p10 = pneg %p2387_p9 }
  0x12   : > { %p2395_p0 = pnand %p2394_p13, %p2388_p10 }
  0x14   : > { %2398 = shalt.err (!%p2395_p0)
}
  0x15   : > { %s2485_s19 = smov [#allocation5]   ;;  %s2399_s20 = scalar_lea.vmem %s233_s13, 16 }
  0x16   : > { %2307 = dma.vmem_to_smem (!%p2574_p6), %s244_s9, 16, %s2485_s19, [#allocation6]  }
  0x17   : > { %p2400_p1 = scmp.ne.s32.totalorder %s233_s13, %s2399_s20  ;;  %p2407_p4 = scmp.lt.s32.totalorder %s233_s13, %s233_s13 }
  0x18   : > { %p2408_p3 = scmp.lt.s32.totalorder %s2399_s20, %s2399_s20 }
  0x19   : > { %p2402_p5 = pnand %p2400_p1, %p2386_p8 }
  0x1a   : > { %p2409_p7 = por %p2408_p3, %p2407_p4 }
  0x1b   : > { %p2403_p2 = pneg %p2402_p5 }
  0x1d   : > { %p2410_p9 = pnand %p2409_p7, %p2403_p2 }
  0x1f   : > { %2413 = shalt.err (!%p2410_p9)
}
  0x20   : > { %s2486_s21 = smov [#allocation3]   ;;  %s2414_s22 = scalar_lea.vmem %s2578_s16, 16 }
  0x21   : > { %2304 = dma.vmem_to_smem (!%p2574_p6), %s233_s13, 16, %s2486_s21, [#allocation4]  }
  0x22   : > { %p2415_p10 = scmp.ne.s32.totalorder %s2578_s16, %s2414_s22  ;;  %p2422_p13 = scmp.lt.s32.totalorder %s2578_s16, %s2578_s16 }
  0x23   : > { %p2423_p0 = scmp.lt.s32.totalorder %s2414_s22, %s2414_s22 }
  0x24   : > { %p2417_p11 = pnand %p2415_p10, %p2386_p8 }
  0x25   : > { %p2424_p3 = por %p2423_p0, %p2422_p13 }
  0x26   : > { %p2418_p12 = pneg %p2417_p11 }
  0x28   : > { %p2425_p2 = pnand %p2424_p3, %p2418_p12 }
  0x2a   : > { %2428 = shalt.err (!%p2425_p2)
}
  0x2b   : > { %s2487_s23 = smov [#allocation7]   ;;  %p2999_p4 = scmp.ne.s32.totalorder %s2997_s10, 0 }
  0x2c   : > { %2310 = dma.vmem_to_smem (!%p2574_p6), %s2578_s16, 16, %s2487_s23, [#allocation6]  }
  0x2d   : > { %282 = sbr.rel (%p2999_p4) target bundleno = 894 (0x37e), region = 52  ;;  %p3000_p1 = scmp.eq.s32.totalorder (!%p2999_p4), %s2551_s28, 0 }
  0x34   : > { %2454 = dma.done.wait (%p3000_p1), [#allocation4], 16   ;;  %p3001_p8 = pmov %p3000_p1 }
  0x35   : > { %p3002_p5 = pmov %p3000_p1 }
  0x36   : > { %2456 = vsyncadd (%p3001_p8), [#allocation4], 4294967280 }
  0x37   : > { %2458 = dma.done.wait (%p3002_p5), [#allocation6], 32   ;;  %p3003_p7 = pmov %p3000_p1 }
  0x39   : > { %2460 = vsyncadd (%p3003_p7), [#allocation6], 4294967264 }
  0x3a   : > { %296 = sfence }
  0x3b   : > { %p320_p9 = scmp.lt.s32.totalorder %s2551_s28, 3  ;;  %p3004_p6 = scmp.ne.s32.totalorder %s2551_s28, 0 }
  0x3c   : > { %v329_v0 = vld [vmem:[%s2989_s3] sm:$0xff] (!%p3004_p6)  ;;  %vm331_vm0 = vcmask (!%p3004_p6), 105472   ;;  %v330_v1 = vld [vmem:[%s2989_s3 + $0x8] sm:$0xff] (!%p3004_p6) }
  0x3d   : > { %s321_s24 = scalar_select %p320_p9, %s2551_s28, 3 }
  0x3e   : > { %328 = sbr.rel (%p3004_p6) target bundleno = 69 (0x45), region = 68  ;;  %332 = vst.msk [vmem:[#allocation2] sm:$0xff] (!%p3004_p6), %vm331_vm0, %v329_v0  ;;  %333 = vst.msk [vmem:[#allocation2 + $0x8] sm:$0xff] (!%p3004_p6), %vm331_vm0, %v330_v1 }
  0x3f   : > { %s2026_s25 = sshll.u32 %s321_s24, 4 }
  0x40   : > { %s2617_s30 = scalar_lea.vmem %s2994_s8, %s2026_s25 }
  0x45 PF: > { %v2630_v2 = vld [vmem:[%s2990_s4] sm:$0xff]  ;;  %v2635_v3 = vld [vmem:[%s2990_s4 + $0x8] sm:$0xf]  ;;  %v2655_v7 = vld [vmem:[%s2992_s6 + $0x10] sm:$0xff]  ;;  %p2008_p10 = scmp.le.s32.totalorder %s2551_s28, 0 }
  0x46   : > { %v2640_v4 = vld [vmem:[%s2991_s5] ss:$0 sm:$0xff]  ;;  %v2650_v6 = vld [vmem:[%s2992_s6 + $0x8] sm:$0xff]  ;;  %v2660_v8 = vld [vmem:[%s2992_s6 + $0x18] sm:$0xff]  ;;  %s2669_s10 = sld [smem:[#allocation3 + %s2551_s28]] (!%p2008_p10) }
  0x47   : > { %v2645_v5 = vld [vmem:[%s2992_s6] sm:$0xff]  ;;  %345 = sbr.rel (%p2008_p10) target bundleno = 886 (0x376), region = 72  ;;  %s2672_s11 = sld [smem:[#allocation5 + %s2551_s28]] (!%p2008_p10)  ;;  %v350_v11 = vld [vmem:[#allocation2 + $0x8] sm:$0xff] (!%p2008_p10)  }
  0x48   : > { %v2665_v9 = vld [vmem:[%s2993_s7] ss:$0 sm:$0xff]  ;;  %s2675_s12 = sld [smem:[#allocation7 + %s2551_s28]] (!%p2008_p10)  ;;  %v3005_v12 = vmov (!%p2008_p10), %v350_v11 }
  0x49   : > { %v349_v10 = vld [vmem:[#allocation2] sm:$0xff] (!%p2008_p10)  }
  0x4a   : > { %v3006_v13 = vmov (!%p2008_p10), %v349_v10 }
  0x4e   : > { %p2009_p11 = scmp.le.s32.totalorder %s2675_s12, 0 }
  0x4f   : > { %s2686_s13 = smov (!%p2009_p11), 0  }
  0x50   : > { %1947 = sbr.rel (%p2009_p11) target bundleno = 884 (0x374), region = 101 }
  0x57 LB: >> { %vm369_vm1 = vcmask 1043456   ;;  %v374_v14 = vand.u32 4294901760, %v2630_v2  ;;  %vm362_vm2 = vcmask 97280   ;;  %s2488_s28 = smov 32   ;;  %v2489_v19 = vmov 12   ;;  %s359_s14 = scvt.s32.f32 %s2475_s13  ;;  %s2475_s13 = sphi %s2686_s13, %s354_s13   ;;  %v2471_v10 = vphi %v349_v10, %v3008_v10   ;;  %v2467_v11 = vphi %v350_v11, %v3007_v11  }
  0x58   : >> { %v371_v15 = vsel %vm369_vm1, %v2635_v3, 0  ;;  %880 = vrot.lane.b32.xlu0 %v2640_v4, %s2488_s28  ;;  %v364_v17 = vsel %vm362_vm2, %v2471_v10, 0  ;;  %2381 = vset.pattern.permute.xlu1 %v2489_v19  ;;  %v367_v21 = vsel %vm362_vm2, %v2467_v11, 0  ;;  %v892_v22 = vlaneseq  ;;  %s2491_s17 = smov 96   ;;  %s2493_s18 = smov 5  }
  0x59   : >> { %v377_v16 = vand.u32 4294901760, %v371_v15  ;;  %v2703_v18 = vsub.f32 %v2630_v2, %v374_v14  ;;  %2380 = vset.pattern.permute.xlu0 %v2489_v19  ;;  %v2706_v20 = vand.u32 4294901760, %v364_v17  ;;  %v2712_v24 = vand.u32 4294901760, %v367_v21  ;;  %s360_s15 = smul.f32 %s359_s14, %s2672_s11  ;;  %s2494_s19 = smov 122  }
  0x5a   : >> { %v2721_v28 = vshrl.u32 %v892_v22, 7  ;;  %v2490_v40 = vmov 0.0   ;;  %s2495_s20 = smov 124   ;;  %s2496_s21 = smov 123   ;;  %vm1248_vm13 = vcmask 261120   ;;  %vm1877_vm0 = vcmask 15360  }
  0x5b   : >> { %v2710_v23 = vpack.c.bf16 %v377_v16, %v374_v14  ;;  %v463_v25 = vand.u32 4294901760, %v2703_v18  ;;  %v2715_v26 = vsub.f32 %v371_v15, %v377_v16  ;;  %v2719_v27 = vsub.f32 %v364_v17, %v2706_v20  ;;  %s361_s16 = sadd.f32 %s360_s15, %s2669_s10  ;;  %s2497_s22 = smov 119  }
  0x5c   : >> { %v2725_v29 = vsub.f32 %v367_v21, %v2712_v24  ;;  %vm894_vm3 = vcmp.ne.s32.totalorder %v2721_v28, 0  ;;  %vm943_vm4 = vcmp.ne.s32.totalorder %v2721_v28, 1  ;;  %v2743_v37 = vsub.s32 0, %v2721_v28  ;;  %s2498_s23 = smov 120   ;;  %s2499_s24 = smov 9  }
  0x5d   : >> { %2196 = vmatprep.subr.bf16.mxu0 %v2710_v23  ;;  %v464_v30 = vsub.f32 %v2703_v18, %v463_v25  ;;  %v470_v31 = vand.u32 4294901760, %v2715_v26  ;;  %v442_v32 = vand.u32 4294901760, %v2719_v27  ;;  %v2203_v33 = vpack.c.bf16 %v2715_v26, %v2703_v18  ;;  %s354_s13 = sadd.s32 1, %s2475_s13  }
  0x5e   : >> { %2198 = vmatpush3.bf16.msra.mxu0 %v2710_v23  ;;  %v452_v34 = vand.u32 4294901760, %v2725_v29  ;;  %v885_v39 = vstv %s361_s16  ;;  %v2013_v41 = vsel %vm894_vm3, 1.0, %v2490_v40  ;;  %v2014_v42 = vsel %vm943_vm4, 1.0, %v2490_v40  ;;  %p353_p12 = scmp.ge.s32.totalorder %s354_s13, %s2675_s12 }
  0x5f   : >> { %v465_v35 = vand.u32 4294901760, %v464_v30  ;;  %v471_v36 = vsub.f32 %v2715_v26, %v470_v31  ;;  %v443_v38 = vsub.f32 %v2719_v27, %v442_v32  ;;  %vm886_vm5 = vcmp.lt.f32.partialorder %v885_v39, %v2471_v10 }
  0x60   : >> { %v453_v43 = vsub.f32 %v2725_v29, %v452_v34  ;;  %v2755_v45 = vsub.s32 1, %v2721_v28  ;;  %v2758_v47 = vsel %vm886_vm5, 1.0, %v2490_v40  ;;  %vm887_vm6 = vcmp.lt.f32.partialorder %v885_v39, %v2467_v11 }
  0x61   : >> { %v472_v44 = vand.u32 4294901760, %v471_v36  ;;  %v444_v46 = vand.u32 4294901760, %v443_v38  ;;  %vm984_vm7 = vcmp.ne.s32.totalorder %v2721_v28, 2  ;;  %v900_v50 = vrot.slane %v2758_v47, %v2743_v37 }
  0x62   : >> { %v454_v48 = vand.u32 4294901760, %v453_v43  ;;  %v949_v51 = vrot.slane %v2758_v47, %v2755_v45  ;;  %v2767_v52 = vsel %vm887_vm6, 1.0, %v2490_v40  ;;  %v2770_v53 = vsub.s32 2, %v2721_v28 }
  0x63   : >> { %v2199_v49 = vpack.c.bf16 %v472_v44, %v465_v35  ;;  %2091 = vmatprep.mubr.f32.mxu0 %v444_v46  ;;  %v905_v54 = vmul.f32 %v2013_v41, %v900_v50  ;;  %v953_v56 = vrot.slane %v2767_v52, %v2755_v45  ;;  %v2015_v57 = vsel %vm984_vm7, 1.0, %v2490_v40 }
  0x64   : >> { %2092 = vmatmul.mubr.f32.vlgmr.msra.gmra.mrb[0].mxu0 %v454_v48  ;;  %v954_v55 = vmul.f32 %v2014_v42, %v949_v51  ;;  %v990_v58 = vrot.slane %v2758_v47, %v2770_v53  ;;  %v994_v59 = vrot.slane %v2767_v52, %v2770_v53  ;;  %v904_v60 = vrot.slane %v2767_v52, %v2743_v37 }
  0x65   : >> { %2200 = vmatprep.subr.bf16.mxu0 %v2199_v49  ;;  %2098 = vmatprep.mubr.f32.mxu0 %v2706_v20  ;;  %v2783_v61 = vsub.s32 3, %v2721_v28  ;;  %v955_v62 = vmul.f32 %v2014_v42, %v953_v56  ;;  %vm1025_vm8 = vcmp.ne.s32.totalorder %v2721_v28, 3  ;;  %v2787_v1 = vsub.s32 4, %v2721_v28 }
  0x66   : >> { %2202 = vmatpush3.bf16.msra.mxu0 %v2199_v49  ;;  %929 = vperm.xlu0 %2380, %v905_v54   ;;  %v995_v63 = vmul.f32 %v2015_v57, %v990_v58  ;;  %v906_v0 = vmul.f32 %v2013_v41, %v904_v60  ;;  %v996_v13 = vmul.f32 %v2015_v57, %v994_v59  ;;  %vm1066_vm9 = vcmp.ne.s32.totalorder %v2721_v28, 4 }
  0x67   : >> { %2204 = vmatprep.subr.bf16.mxu0 %v2203_v33  ;;  %970 = vperm.xlu1 %2381, %v954_v55   ;;  %v1035_v12 = vrot.slane %v2767_v52, %v2783_v61  ;;  %v982_v15 = vadd.f32 %v954_v55, %v905_v54  ;;  %v2016_v16 = vsel %vm1025_vm8, 1.0, %v2490_v40  ;;  %v1031_v17 = vrot.slane %v2758_v47, %v2783_v61 }
  0x68   : >> { %v983_v14 = vadd.f32 %v955_v62, %v906_v0  ;;  %v1076_v19 = vrot.slane %v2767_v52, %v2787_v1  ;;  %v2017_v30 = vsel %vm1066_vm9, 1.0, %v2490_v40  ;;  %v1072_v41 = vrot.slane %v2758_v47, %v2787_v1 }
  0x69   : >> { %v1037_v21 = vmul.f32 %v2016_v16, %v1035_v12  ;;  %v1023_v38 = vadd.f32 %v995_v63, %v982_v15  ;;  %v1036_v39 = vmul.f32 %v2016_v16, %v1031_v17  ;;  %v2804_v42 = vsub.s32 5, %v2721_v28 }
  0x6a   : >> { %1011 = vperm.xlu0 %2380, %v995_v63   ;;  %v1024_v22 = vadd.f32 %v996_v13, %v983_v14  ;;  %v1078_v36 = vmul.f32 %v2017_v30, %v1076_v19  ;;  %vm1107_vm10 = vcmp.ne.s32.totalorder %v2721_v28, 5  ;;  %v1077_v46 = vmul.f32 %v2017_v30, %v1072_v41 }
  0x6b   : >> { %934 = vperm.xlu1 %2381, %v906_v0   ;;  %v1064_v44 = vadd.f32 %v1036_v39, %v1023_v38  ;;  %v1113_v48 = vrot.slane %v2758_v47, %v2804_v42  ;;  %v2814_v49 = vsub.s32 6, %v2721_v28  ;;  %v2018_v50 = vsel %vm1107_vm10, 1.0, %v2490_v40 }
  0x6c   : >> { %2099 = vmatmul.mubr.f32.vlgmr.msra.gmra.mrb[0].mxu0 %v2712_v24  ;;  %v1065_v35 = vadd.f32 %v1037_v21, %v1024_v22  ;;  %vm1148_vm11 = vcmp.ne.s32.totalorder %v2721_v28, 6  ;;  %vm1189_vm12 = vcmp.ne.s32.totalorder %v2721_v28, 7  ;;  %v1117_v59 = vrot.slane %v2767_v52, %v2804_v42 }
  0x6d   : >> { %2206 = vmatpush3.bf16.msra.mxu0 %v2203_v33  ;;  %2105 = vmatprep.mubr.f32.mxu0 %v2719_v27  ;;  %v2211_v33 = vpack.c.bf16 %v470_v31, %v463_v25  ;;  %v1105_v18 = vadd.f32 %v1077_v46, %v1064_v44  ;;  %v1118_v25 = vmul.f32 %v2018_v50, %v1113_v48  ;;  %v2825_v31 = vsub.s32 7, %v2721_v28 }
  0x6e   : >> { %2208 = vmatprep.subr.bf16.mxu0 %v2710_v23  ;;  %1016 = vperm.xlu0 %2380, %v996_v13   ;;  %v1106_v43 = vadd.f32 %v1078_v36, %v1065_v35  ;;  %v1154_v26 = vrot.slane %v2758_v47, %v2814_v49  ;;  %v2019_v51 = vsel %vm1148_vm11, 1.0, %v2490_v40  ;;  %v1256_v0 = vand.u32 4294901760, %v2645_v5 }
  0x6f   : >> { %975 = vperm.xlu1 %2381, %v955_v62   ;;  %v1146_v54 = vadd.f32 %v1118_v25, %v1105_v18  ;;  %v1195_v27 = vrot.slane %v2758_v47, %v2825_v31  ;;  %v1199_v63 = vrot.slane %v2767_v52, %v2825_v31  ;;  %v1259_v12 = vand.u32 4294901760, %v2650_v6 }
  0x70   : >> { %v1159_v55 = vmul.f32 %v2019_v51, %v1154_v26  ;;  %v1346_v13 = vsub.f32 %v2645_v5, %v1256_v0  ;;  %v1265_v22 = vand.u32 4294901760, %v2660_v8  ;;  %vm1880_vm1 = vcmask 23552  }
  0x71   : >> { %v1353_v14 = vsub.f32 %v2650_v6, %v1259_v12  ;;  %v2858_v30 = vpack.c.bf16 %v1259_v12, %v1256_v0  ;;  %vm1883_vm3 = vcmask 31744   ;;  %vm1886_vm4 = vcmask 72704  }
  0x72   : >> { %1052 = vperm.xlu0 %2380, %v1036_v39   ;;  %v1187_v57 = vadd.f32 %v1159_v55, %v1146_v54  ;;  %v1347_v17 = vand.u32 4294901760, %v1346_v13  ;;  %v1367_v38 = vsub.f32 %v2660_v8, %v1265_v22  ;;  %vm1889_vm5 = vcmask 80896  }
  0x73   : >> { %1057 = vperm.xlu1 %2381, %v1037_v21   ;;  %v1354_v19 = vand.u32 4294901760, %v1353_v14  ;;  %v1262_v21 = vand.u32 4294901760, %v2655_v7  ;;  %v2866_v54 = vpack.c.bf16 %v1353_v14, %v1346_v13  ;;  %vm1892_vm6 = vcmask 89088  }
  0x74   : >> { %2106 = vmatmul.mubr.f32.vlgmr.msra.gmra.mrb[0].mxu0 %v2725_v29  ;;  %v1368_v44 = vand.u32 4294901760, %v1367_v38 }
  0x75   : >> { %2210 = vmatpush3.bf16.msra.mxu0 %v2710_v23  ;;  %2112 = vmatprep.mubr.f32.mxu0 %v442_v32  ;;  %v2020_v32 = vsel %vm1189_vm12, 1.0, %v2490_v40  ;;  %v1355_v35 = vsub.f32 %v1353_v14, %v1354_v19  ;;  %v2864_v26 = vpack.c.bf16 %v1265_v22, %v1262_v21 }
  0x76   : >> { %2212 = vmatprep.subr.bf16.mxu0 %v2211_v33  ;;  %1093 = vperm.xlu0 %2380, %v1077_v46   ;;  %v1200_v56 = vmul.f32 %v2020_v32, %v1195_v27  ;;  %v1201_v15 = vmul.f32 %v2020_v32, %v1199_v63  ;;  %v2873_v27 = vpack.c.bf16 %v1354_v19, %v1347_v17 }
  0x77   : >> { %1098 = vperm.xlu1 %2381, %v1078_v36   ;;  %v1360_v36 = vsub.f32 %v2655_v7, %v1262_v21 }
  0x78   : >> { %v1228_v28 = vadd.f32 %v1200_v56, %v1187_v57 }
  0x7a   : >> { %1134 = vperm.xlu0 %2380, %v1118_v25  }
  0x7c   : >> { %2113 = vmatmul.mubr.f32.vlgmr.msra.gmra.mrb[0].mxu0 %v452_v34 }
  0x7d   : >> { %2214 = vmatpush3.bf16.msra.mxu0 %v2211_v33  ;;  %2119 = vmatprep.mubr.f32.mxu0 %v2706_v20  ;;  %v1361_v33 = vand.u32 4294901760, %v1360_v36 }
  0x7e   : >> { %2216 = vmatprep.subr.bf16.mxu0 %v2710_v23  ;;  %1175 = vperm.xlu0 %2380, %v1159_v55   ;;  %v2868_v55 = vpack.c.bf16 %v1367_v38, %v1360_v36 }
  0x7f   : >> { %v1362_v48 = vsub.f32 %v1360_v36, %v1361_v33  ;;  %v2875_v32 = vpack.c.bf16 %v1368_v44, %v1361_v33 }
  0x81   : >> { %v1363_v18 = vand.u32 4294901760, %v1362_v48 }
  0x82   : >> { %1216 = vperm.xlu0 %2380, %v1200_v56   ;;  %v2492_v56 = vmov 6  }
  0x84   : >> { %2120 = vmatmul.mubr.f32.vlgmr.msra.gmra.mrb[0].mxu0 %v2712_v24 }
  0x85   : >> { %2218 = vmatpush3.bf16.msra.mxu0 %v2710_v23  ;;  %2126 = vmatprep.mubr.f32.mxu0 %v2706_v20  ;;  %v1119_v23 = vmul.f32 %v2018_v50, %v1117_v59  ;;  %v1158_v20 = vrot.slane %v2767_v52, %v2814_v49  ;;  %v1348_v52 = vsub.f32 %v1346_v13, %v1347_v17 }
  0x86   : >> { %1232 = vperm.xlu0 %2380, %v1228_v28   ;;  %2220 = vmatprep.subr.bf16.mxu0 %v2858_v30  ;;  %v1369_v50 = vsub.f32 %v1367_v38, %v1368_v44 }
  0x87   : >> { %v1160_v62 = vmul.f32 %v2019_v51, %v1158_v20  ;;  %v1349_v41 = vand.u32 4294901760, %v1348_v52 }
  0x88   : >> { %v1370_v25 = vand.u32 4294901760, %v1369_v50 }
  0x8a   : >> { %v2231_v51 = vpack.c.bf16 %v1370_v25, %v1363_v18  ;;  %2382 = vset.pattern.permute.xlu0 %v2492_v56 }
  0x8b   : >> { %1784 = vperm.xlu0 %2382, %v2471_v10  }
  0x8c   : >> { %2127 = vmatmul.mubr.f32.vlgmr.msra.gmra.mrb[0].mxu0 %v2712_v24  ;;  %v1147_v24 = vadd.f32 %v1119_v23, %v1106_v43  ;;  %v1356_v43 = vand.u32 4294901760, %v1355_v35 }
  0x8d   : >> { %2222 = vmatpush3.bf16.msra.mxu0 %v2858_v30 }
  0x8e   : >> { %v1188_v16 = vadd.f32 %v1160_v62, %v1147_v24  ;;  %v2227_v46 = vpack.c.bf16 %v1356_v43, %v1349_v41  ;;  %2224 = vmatprep.subr.bf16.mxu0 %v2864_v26 }
  0x8f   : >> { %1795 = vrot.lane.b32.xlu0 %v2467_v11, %s2493_s18 }
  0x90   : >> { %v1229_v39 = vadd.f32 %v1201_v15, %v1188_v16  ;;  %2228 = vmatprep.subr.bf16.mxu1 %v2227_v46 }
  0x91   : >> { %2230 = vmatpush3.bf16.msra.mxu1 %v2227_v46  ;;  %2226 = vmatpush3.bf16.msra.mxu0 %v2864_v26 }
  0x92   : >> { %2232 = vmatprep.subr.bf16.mxu1 %v2231_v51 }
  0x93   : >> { %1803 = vrot.lane.b32.xlu0 %v2467_v11, %s2494_s19 }
  0x95   : >> { %2234 = vmatpush3.bf16.msra.mxu1 %v2231_v51 }
  0x96   : >> { %2236 = vmatprep.subr.bf16.mxu1 %v2866_v54 }
  0x97   : >> { %1829 = vrot.lane.b32.xlu0 %v2467_v11, %s2495_s20 }
  0x9b   : >> { %1813 = vrot.lane.b32.xlu0 %v2467_v11, %s2496_s21 }
  0xca   : >> { %v881_v29 = vpop.permute.xlu0 %880 }
  0xe5   : >> { %v930_v28 = vpop.permute.xlu0 %929 }
  0xe6   : >> { %v971_v57 = vpop.permute.xlu1 %970 }
 0x15f   : >> { %v2840_v34 = vpop.f32.mrb[0].mxu0 }
 0x160   : >> { %v2842_v47 = vpop.f32.mrb[1].mxu0  ;;  %v884_v58 = vadd.f32 %v2840_v34, %v881_v29  ;;  %v914_v63 = vrot.slane %v2840_v34, %v2743_v37  ;;  %v963_v0 = vrot.slane %v2840_v34, %v2755_v45  ;;  %v1045_v50 = vrot.slane %v2840_v34, %v2783_v61 }
 0x161   : >> { %v883_v60 = vadd.f32 %v881_v29, %v2842_v47  ;;  %v935_v29 = vpop.permute.xlu1 %934  ;;  %v959_v16 = vrot.slane %v2842_v47, %v2755_v45  ;;  %v1000_v17 = vrot.slane %v2842_v47, %v2770_v53  ;;  %v1041_v19 = vrot.slane %v2842_v47, %v2783_v61 }
 0x162   : >> { %919 = vrot.lane.b32.xlu1 %v884_v58, %s2491_s17  ;;  %v1012_v58 = vpop.permute.xlu0 %1011  ;;  %v1082_v21 = vrot.slane %v2842_v47, %v2787_v1  ;;  %v1123_v18 = vrot.slane %v2842_v47, %v2804_v42 }
 0x165   : >> { %v976_v59 = vpop.permute.xlu1 %975 }
 0x166   : >> { %917 = vrot.lane.b32.xlu1 %v883_v60, %s2491_s17  ;;  %v1017_v60 = vpop.permute.xlu0 %1016 }
 0x16a   : >> { %1139 = vperm.xlu1 %2381, %v1119_v23   ;;  %v2887_v23 = vpop.permute.xlu1 %1057  ;;  %v1053_v20 = vpop.permute.xlu0 %1052 }
 0x16e   : >> { %1180 = vperm.xlu1 %2381, %v1160_v62   ;;  %v2889_v24 = vpop.permute.xlu1 %1098  ;;  %v1094_v12 = vpop.permute.xlu0 %1093 }
 0x172   : >> { %1221 = vperm.xlu1 %2381, %v1201_v15   ;;  %v910_v15 = vrot.slane %v2842_v47, %v2743_v37  ;;  %v1004_v37 = vrot.slane %v2840_v34, %v2770_v53  ;;  %v1135_v46 = vpop.permute.xlu0 %1134 }
 0x176   : >> { %1237 = vperm.xlu1 %2381, %v1229_v39  }
 0x17a   : >> { %2383 = vset.pattern.permute.xlu1 %v2492_v56 }
 0x17b   : >> { %1788 = vperm.xlu1 %2383, %v2467_v11  }
 0x17f   : >> { %1793 = vrot.lane.b32.xlu1 %v2471_v10, %s2493_s18 }
 0x183   : >> { %1801 = vrot.lane.b32.xlu1 %v2471_v10, %s2494_s19 }
 0x187   : >> { %1827 = vrot.lane.b32.xlu1 %v2471_v10, %s2495_s20 }
 0x18b   : >> { %1811 = vrot.lane.b32.xlu1 %v2471_v10, %s2496_s21 }
 0x1d4   : >> { %v2891_v62 = vpop.permute.xlu1 %919 }
 0x1d5   : >> { %v924_v13 = vadd.f32 %v2891_v62, %v914_v63  ;;  %v965_v14 = vadd.f32 %v963_v0, %v2891_v62  ;;  %v1006_v48 = vadd.f32 %v1004_v37, %v2891_v62  ;;  %v1164_v63 = vrot.slane %v2842_v47, %v2814_v49 }
 0x1d7   : >> { %v926_v39 = vmax.f32 %v924_v13, 0.0  ;;  %v967_v41 = vmax.f32 %v965_v14, 0.0  ;;  %v1205_v14 = vrot.slane %v2842_v47, %v2825_v31  ;;  %v1008_v61 = vmax.f32 %v1006_v48, 0.0 }
 0x1d8   : >> { %v918_v22 = vpop.permute.xlu1 %917  ;;  %v1168_v48 = vrot.slane %v2840_v34, %v2814_v49 }
 0x1d9   : >> { %v923_v52 = vadd.f32 %v918_v22, %v910_v15  ;;  %v964_v35 = vadd.f32 %v959_v16, %v918_v22  ;;  %v1005_v36 = vadd.f32 %v1000_v17, %v918_v22  ;;  %v1046_v38 = vadd.f32 %v1041_v19, %v918_v22 }
 0x1da   : >> { %v1087_v44 = vadd.f32 %v1082_v21, %v918_v22  ;;  %v938_v53 = vmul.f32 %v935_v29, %v926_v39  ;;  %v979_v0 = vmul.f32 %v976_v59, %v967_v41  ;;  %v1128_v13 = vadd.f32 %v1123_v18, %v918_v22 }
 0x1db   : >> { %v925_v45 = vmax.f32 %v923_v52, 0.0  ;;  %v966_v43 = vmax.f32 %v964_v35, 0.0  ;;  %v1007_v33 = vmax.f32 %v1005_v36, 0.0  ;;  %v1048_v56 = vmax.f32 %v1046_v38, 0.0  ;;  %v1176_v36 = vpop.permute.xlu0 %1175 }
 0x1dc   : >> { %v1089_v16 = vmax.f32 %v1087_v44, 0.0  ;;  %v1169_v19 = vadd.f32 %v1164_v63, %v918_v22  ;;  %v1047_v21 = vadd.f32 %v1045_v50, %v2891_v62  ;;  %v1210_v35 = vadd.f32 %v1205_v14, %v918_v22 }
 0x1dd   : >> { %v937_v25 = vmul.f32 %v930_v28, %v925_v45  ;;  %v978_v51 = vmul.f32 %v971_v57, %v966_v43  ;;  %v1019_v15 = vmul.f32 %v1012_v58, %v1007_v33  ;;  %v1060_v28 = vmul.f32 %v1053_v20, %v1048_v56 }
 0x1de   : >> { %v1130_v57 = vmax.f32 %v1128_v13, 0.0  ;;  %v981_v38 = vadd.f32 %v979_v0, %v938_v53  ;;  %v1086_v29 = vrot.slane %v2840_v34, %v2787_v1  ;;  %v1101_v39 = vmul.f32 %v1094_v12, %v1089_v16 }
 0x1df   : >> { %v980_v17 = vadd.f32 %v978_v51, %v937_v25  ;;  %v1171_v41 = vmax.f32 %v1169_v19, 0.0  ;;  %v1020_v47 = vmul.f32 %v1017_v60, %v1008_v61  ;;  %v1049_v58 = vmax.f32 %v1047_v21, 0.0  ;;  %v1217_v12 = vpop.permute.xlu0 %1216 }
 0x1e0   : >> { %v1088_v37 = vadd.f32 %v1086_v29, %v2891_v62  ;;  %v1127_v45 = vrot.slane %v2840_v34, %v2804_v42  ;;  %v1142_v33 = vmul.f32 %v1135_v46, %v1130_v57  ;;  %v1212_v20 = vmax.f32 %v1210_v35, 0.0 }
 0x1e1   : >> { %v1021_v52 = vadd.f32 %v1019_v15, %v980_v17  ;;  %v1022_v44 = vadd.f32 %v1020_v47, %v981_v38  ;;  %v1183_v50 = vmul.f32 %v1176_v36, %v1171_v41  ;;  %v1061_v60 = vmul.f32 %v2887_v23, %v1049_v58 }
 0x1e2   : >> { %v1129_v22 = vadd.f32 %v1127_v45, %v2891_v62  ;;  %v1090_v18 = vmax.f32 %v1088_v37, 0.0  ;;  %v1170_v25 = vadd.f32 %v1168_v48, %v2891_v62  ;;  %v1224_v42 = vmul.f32 %v1217_v12, %v1212_v20 }
 0x1e3   : >> { %v1062_v59 = vadd.f32 %v1060_v28, %v1021_v52  ;;  %v1063_v63 = vadd.f32 %v1061_v60, %v1022_v44  ;;  %v1209_v53 = vrot.slane %v2840_v34, %v2825_v31 }
 0x1e4   : >> { %v1131_v46 = vmax.f32 %v1129_v22, 0.0  ;;  %v1102_v49 = vmul.f32 %v2889_v24, %v1090_v18  ;;  %v1172_v14 = vmax.f32 %v1170_v25, 0.0 }
 0x1e5   : >> { %v1103_v43 = vadd.f32 %v1101_v39, %v1062_v59  ;;  %v1211_v15 = vadd.f32 %v1209_v53, %v2891_v62 }
 0x1e6   : >> { %v1104_v17 = vadd.f32 %v1102_v49, %v1063_v63 }
 0x1e7   : >> { %v1144_v1 = vadd.f32 %v1142_v33, %v1103_v43  ;;  %v1213_v52 = vmax.f32 %v1211_v15, 0.0 }
 0x1e9   : >> { %v1140_v51 = vpop.permute.xlu1 %1139  ;;  %v1185_v56 = vadd.f32 %v1183_v50, %v1144_v1 }
 0x1ea   : >> { %v1143_v13 = vmul.f32 %v1140_v51, %v1131_v46  ;;  %v1819_v46 = vand.u32 2147483647, %v2471_v10 }
 0x1eb   : >> { %v1226_v0 = vadd.f32 %v1224_v42, %v1185_v56  ;;  %v1820_v42 = vand.u32 2147483647, %v2467_v11 }
 0x1ec   : >> { %v1145_v21 = vadd.f32 %v1143_v13, %v1104_v17  ;;  %vm1821_vm15 = vcmp.gt.f32.partialorder %v1819_v46, 1e-05 }
 0x1ed   : >> { %v1181_v23 = vpop.permute.xlu1 %1180  ;;  %v1250_v16 = vsel %vm1248_vm13, %v1226_v0, 0  ;;  %vm1822_vm14 = vcmp.gt.f32.partialorder %v1820_v42, 1e-05 }
 0x1ee   : >> { %v1184_v19 = vmul.f32 %v1181_v23, %v1172_v14  ;;  %v1324_v61 = vand.u32 4294901760, %v1250_v16 }
 0x1f0   : >> { %2148 = vmatprep.mubr.f32.mxu1 %v1324_v61  ;;  %v1325_v28 = vsub.f32 %v1250_v16, %v1324_v61  ;;  %v1186_v35 = vadd.f32 %v1184_v19, %v1145_v21  ;;  %v2022_v21 = vsel %vm1821_vm15, 1.0, %v2490_v40 }
 0x1f1   : >> { %v1222_v57 = vpop.permute.xlu1 %1221 }
 0x1f2   : >> { %v1225_v31 = vmul.f32 %v1222_v57, %v1213_v52  ;;  %v1326_v34 = vand.u32 4294901760, %v1325_v28 }
 0x1f4   : >> { %v1227_v36 = vadd.f32 %v1225_v31, %v1186_v35  ;;  %v1327_v24 = vsub.f32 %v1325_v28, %v1326_v34 }
 0x1f6   : >> { %v1253_v38 = vsel %vm1248_vm13, %v1227_v36, 0  ;;  %v1328_v29 = vand.u32 4294901760, %v1327_v24 }
 0x1f7   : >> { %v1334_v62 = vand.u32 4294901760, %v1253_v38 }
 0x1f8   : >> { %2137 = vmatprep.mubr.f32.mxu0 %v1328_v29 }
 0x1f9   : >> { %v1335_v59 = vsub.f32 %v1253_v38, %v1334_v62  ;;  %2149 = vmatmul.mubr.f32.vlgmr.msra.gmra.mrb[0].mxu1 %v1334_v62 }
 0x1fa   : >> { %2238 = vmatpush3.bf16.msra.mxu1 %v2866_v54  ;;  %2159 = vmatprep.mubr.f32.mxu1 %v1325_v28  ;;  %v1233_v54 = vpop.permute.xlu0 %1232 }
 0x1fb   : >> { %2240 = vmatprep.subr.bf16.mxu1 %v2868_v55  ;;  %v1336_v39 = vand.u32 4294901760, %v1335_v59  ;;  %v1246_v1 = vmul.f32 %v2665_v9, %v1233_v54 }
 0x1fd   : >> { %v1337_v41 = vsub.f32 %v1335_v59, %v1336_v39 }
 0x1fe   : >> { %2242 = vmatpush3.bf16.msra.mxu1 %v2868_v55  ;;  %v1238_v55 = vpop.permute.xlu1 %1237  ;;  %v1785_v58 = vpop.permute.xlu0 %1784 }
 0x1ff   : >> { %v1338_v47 = vand.u32 4294901760, %v1337_v41  ;;  %2244 = vmatprep.subr.bf16.mxu1 %v2858_v30  ;;  %v1791_v37 = vmul.f32 %v2471_v10, %v1785_v58  ;;  %v1247_v48 = vmul.f32 %v2665_v9, %v1238_v55 }
 0x201   : >> { %2138 = vmatmul.mubr.f32.vlgmr.msra.gmra.mrb[2].mxu0 %v1338_v47  ;;  %2160 = vmatmul.mubr.f32.vlgmr.msra.gmra.mrb[0].mxu1 %v1335_v59 }
 0x202   : >> { %2246 = vmatpush3.bf16.msra.mxu1 %v2858_v30  ;;  %2170 = vmatprep.mubr.f32.mxu1 %v1326_v34 }
 0x203   : >> { %2248 = vmatprep.subr.bf16.mxu1 %v2864_v26  ;;  %1839 = vrot.lane.b32.xlu1 %v1791_v37, %s2497_s22 }
 0x206   : >> { %2250 = vmatpush3.bf16.msra.mxu1 %v2864_v26 }
 0x207   : >> { %2252 = vmatprep.subr.bf16.mxu1 %v2873_v27 }
 0x209   : >> { %2171 = vmatmul.mubr.f32.vlgmr.msra.gmra.mrb[0].mxu1 %v1336_v39 }
 0x20a   : >> { %2254 = vmatpush3.bf16.msra.mxu1 %v2873_v27  ;;  %2181 = vmatprep.mubr.f32.mxu1 %v1324_v61  ;;  %v1789_v27 = vpop.permute.xlu1 %1788 }
 0x20b   : >> { %2256 = vmatprep.subr.bf16.mxu1 %v2875_v32  ;;  %v1792_v45 = vmul.f32 %v2467_v11, %v1789_v27  ;;  %v1897_v27 = vstv %s2672_s11 }
 0x20d   : >> { %1841 = vrot.lane.b32.xlu0 %v1792_v45, %s2497_s22 }
 0x20e   : >> { %2258 = vmatpush3.bf16.msra.mxu1 %v2875_v32  ;;  %v1796_v32 = vpop.permute.xlu0 %1795  ;;  %v1794_v43 = vpop.permute.xlu1 %1793 }
 0x20f   : >> { %2260 = vmatprep.subr.bf16.mxu1 %v2858_v30  ;;  %v1799_v33 = vmul.f32 %v2471_v10, %v1794_v43 }
 0x211   : >> { %2182 = vmatmul.mubr.f32.vlgmr.msra.gmra.mrb[0].mxu1 %v1334_v62  ;;  %1847 = vrot.lane.b32.xlu1 %v1799_v33, %s2498_s23 }
 0x212   : >> { %2262 = vmatpush3.bf16.msra.mxu1 %v2858_v30  ;;  %2192 = vmatprep.mubr.f32.mxu1 %v1324_v61  ;;  %v1800_v30 = vmul.f32 %v2467_v11, %v1796_v32  ;;  %v1804_v44 = vpop.permute.xlu0 %1803  ;;  %v1802_v22 = vpop.permute.xlu1 %1801  ;;  %v2023_v61 = vsel %vm1822_vm14, 1.0, %v2490_v40 }
 0x213   : >> { %2264 = vmatprep.subr.bf16.mxu1 %v2864_v26 }
 0x214   : >> { %1849 = vrot.lane.b32.xlu0 %v1800_v30, %s2498_s23 }
 0x216   : >> { %2266 = vmatpush3.bf16.msra.mxu1 %v2864_v26  ;;  %v1830_v50 = vpop.permute.xlu0 %1829  ;;  %v1828_v60 = vpop.permute.xlu1 %1827 }
 0x219   : >> { %2193 = vmatmul.mubr.f32.vlgmr.msra.gmra.mrb[0].mxu1 %v1334_v62 }
 0x21a   : >> { %v1814_v49 = vpop.permute.xlu0 %1813  ;;  %v1812_v15 = vpop.permute.xlu1 %1811 }
 0x275   : >> { %v1840_v35 = vpop.permute.xlu1 %1839 }
 0x276   : >> { %v1878_v38 = vsel %vm1877_vm0, %v1840_v35, 0.0 }
 0x27f   : >> { %v1842_v57 = vpop.permute.xlu0 %1841 }
 0x280   : >> { %v1879_v36 = vsel %vm1877_vm0, %v1842_v57, 0.0 }
 0x283   : >> { %v1848_v34 = vpop.permute.xlu1 %1847 }
 0x284   : >> { %v1881_v40 = vsel %vm1880_vm1, %v1878_v38, %v1848_v34 }
 0x285   : >> { %v1884_v47 = vsel %vm1883_vm3, %v1881_v40, 0.0 }
 0x286   : >> { %v1850_v31 = vpop.permute.xlu0 %1849 }
 0x287   : >> { %v1882_v62 = vsel %vm1880_vm1, %v1879_v36, %v1850_v31 }
 0x288   : >> { %v1885_v41 = vsel %vm1883_vm3, %v1882_v62, 0.0 }
 0x2d4   : >> { %v2139_v26 = vpop.f32.mrb[2].mxu0 }
 0x2d5   : >> { %v1330_v20 = vpop.f32.mrb[3].mxu0  ;;  %v1341_v12 = vadd.f32 %v2139_v26, %v1247_v48 }
 0x2d6   : >> { %v1331_v18 = vadd.f32 %v1330_v20, %v1246_v1 }
 0x2ec   : >> { %v2194_v25 = vpop.f32.mrb[0].mxu1 }
 0x2ed   : >> { %v2268_v51 = vadd.f32 %v2194_v25, %v1341_v12  ;;  %v1773_v56 = vpop.f32.mrb[1].mxu1 }
 0x2ee   : >> { %v2270_v63 = vadd.f32 %v1773_v56, %v1331_v18 }
 0x2ef   : >> { %v1810_v53 = vadd.f32 0.16666667, %v2268_v51  ;;  %v1808_v0 = vmul.f32 %v2268_v51, %v1804_v44  ;;  %v1834_v23 = vmul.f32 %v2268_v51, %v1830_v50 }
 0x2f0   : >> { %v1809_v13 = vadd.f32 0.16666667, %v2270_v63  ;;  %v1807_v14 = vmul.f32 %v2270_v63, %v1802_v22  ;;  %v1833_v17 = vmul.f32 %v2270_v63, %v1828_v60 }
 0x2f1   : >> { %1857 = vrot.lane.b32.xlu0 %v1808_v0, %s2499_s24  ;;  %v1818_v16 = vmul.f32 %v1814_v49, %v1810_v53  ;;  %v1836_v52 = vmul.f32 %v2023_v61, %v1834_v23 }
 0x2f2   : >> { %1855 = vrot.lane.b32.xlu1 %v1807_v14, %s2499_s24  ;;  %v1817_v19 = vmul.f32 %v1812_v15, %v1809_v13  ;;  %v1835_v28 = vmul.f32 %v2022_v21, %v1833_v17 }
 0x2f5   : >> { %1865 = vrot.lane.b32.xlu0 %v1818_v16, %s2499_s24 }
 0x2f6   : >> { %1863 = vrot.lane.b32.xlu1 %v1817_v19, %s2499_s24 }
 0x2f9   : >> { %1873 = vrot.lane.b32.xlu0 %v1836_v52, %s2499_s24 }
 0x2fa   : >> { %1871 = vrot.lane.b32.xlu1 %v1835_v28, %s2499_s24 }
 0x363   : >> { %v1858_v24 = vpop.permute.xlu0 %1857 }
 0x364   : >> { %v1856_v29 = vpop.permute.xlu1 %1855  ;;  %v1888_v54 = vsel %vm1886_vm4, %v1885_v41, %v1858_v24 }
 0x365   : >> { %v1887_v55 = vsel %vm1886_vm4, %v1884_v47, %v1856_v29 }
 0x367   : >> { %v1866_v59 = vpop.permute.xlu0 %1865 }
 0x368   : >> { %v1864_v39 = vpop.permute.xlu1 %1863  ;;  %v1891_v58 = vsel %vm1889_vm5, %v1888_v54, %v1866_v59 }
 0x369   : >> { %v1890_v45 = vsel %vm1889_vm5, %v1887_v55, %v1864_v39 }
 0x36b   : >> { %v1874_v37 = vpop.permute.xlu0 %1873 }
 0x36c   : >> { %v1894_v32 = vsel %vm1892_vm6, %v1891_v58, %v1874_v37  ;;  %v1872_v43 = vpop.permute.xlu1 %1871 }
 0x36d   : >> { %v1896_v30 = vsel %vm362_vm2, %v1894_v32, 0.0  ;;  %v1893_v33 = vsel %vm1892_vm6, %v1890_v45, %v1872_v43  ;;  %356 = sbr.rel (!%p353_p12) target bundleno = 87 (0x57), region = 107 }
 0x36e   : >> { %v1899_v26 = vmul.f32 %v1897_v27, %v1896_v30  ;;  %v1895_v20 = vsel %vm362_vm2, %v1893_v33, 0.0 }
 0x36f   : >> { %v1898_v44 = vmul.f32 %v1897_v27, %v1895_v20 }
 0x370   : >> { %v1901_v22 = vadd.f32 %v2467_v11, %v1899_v26  }
 0x371   : >> { %v1900_v48 = vadd.f32 %v2471_v10, %v1898_v44  }
 0x372   : >> { %v3007_v11 = vmov %v1901_v22  ;;  %v3009_v12 = vmov (%p353_p12), %v1901_v22 }
 0x373   : >> { %v3008_v10 = vmov %v1900_v48  ;;  %v3010_v13 = vmov (%p353_p12), %v1900_v48 }
 0x374 PF: > { %vm1902_vm2 = vcmask 105472   ;;  %v2483_v13 = vphi %v3006_v13, %v3010_v13   ;;  %v2479_v12 = vphi %v3005_v12, %v3009_v12  }
 0x375   : > { %1903 = vst.msk [vmem:[#allocation2] sm:$0xff] %vm1902_vm2, %v2483_v13  ;;  %1904 = vst.msk [vmem:[#allocation2 + $0x8] sm:$0xff] %vm1902_vm2, %v2479_v12 }
 0x376 PF: > { %vm1907_vm7 = vcmask 105472  }
 0x37c   : > { %v1905_v10 = vld [vmem:[#allocation2] sm:$0xff]  ;;  %v1906_v1 = vld [vmem:[#allocation2 + $0x8] sm:$0xff] }
 0x37d   : > { %1908 = vst.msk [vmem:[%s2617_s30] sm:$0xff] %vm1907_vm7, %v1905_v10  ;;  %1909 = vst.msk [vmem:[%s2617_s30 + $0x8] sm:$0xff] %vm1907_vm7, %v1906_v1 }
 0x37e PF: > { %s20_s27 = sadd.s32 1, %s2463_s27  }
 0x37f   : > { %p17_p13 = scmp.ge.s32.totalorder %s20_s27, 6  }
 0x381   :  { %19 = sbr.rel (!%p17_p13) target bundleno = 2 (0x2), region = 118 }
 0x388   :  { %1931 = vsyncpa [#allocation4], 1 }
 0x389   :  { %1933 = vsyncpa [#allocation4 + $0x1], 1 }
 0x38a   :  { %1934 = vsyncpa [#allocation6], 1 }

</bundles_post_ra>
